<compile_context>
chip_gen: v6e
topology: v6e:2x2x1
jax: 0.10.0
libtpu: 0.0.40
codegen_flags: <defaults>
</compile_context>

<pallas_src>
import math
from functools import partial

import jax
import jax.numpy as jnp
from jax import lax
from jax.experimental import pallas as pl
from jax.experimental.pallas import tpu as pltpu


def _mlp_packed_kernel(x_ref, *refs, compute_dtype):
    """Fused bias-free MLP forward on block-diagonally packed samples.

    x_ref      : (tmp, pack*input_dim)  tile of packed inputs (pack samples/row)
    w_refs[:-1]: hidden weights, each (pack*in_i, pack*out_i) block-diagonal
    w_refs[-1] : (pack, pack*h_last) final-layer weight; row g carries w_out
                 for sample-group g (zeros elsewhere)
    o_ref      : (1, pack, tmp) output tile, lane-dense along tmp
    """
    *w_refs, o_ref = refs
    hidden_w = w_refs[:-1]
    w_out_ref = w_refs[-1]

    h = x_ref[...]
    if h.dtype != compute_dtype:
        h = h.astype(compute_dtype)
    for w_ref in hidden_w:
        h = jnp.dot(h, w_ref[...], preferred_element_type=jnp.float32)
        h = jnp.maximum(h, 0.0).astype(compute_dtype)          # ReLU (hidden only)

    # Final linear layer (no activation).  Contract over the lane axis of both
    # operands (A @ B^T pattern): result (pack, tmp) is lane-dense -> unmasked
    # full-width stores, and the MXU output width is tmp instead of 1.
    out = lax.dot_general(w_out_ref[...], h,
                          (((1,), (1,)), ((), ())),
                          preferred_element_type=jnp.float32)
    o_ref[...] = out[None].astype(o_ref.dtype)


def _default_pack():
    """pack=8 fills the 256-wide MXU on v6e/v7x; pack=4 matches v5e's 128^2."""
    try:
        kind = jax.devices()[0].device_kind.lower()
    except Exception:
        return 4
    if "v6" in kind or "v7" in kind:
        return 8
    return 4


def _choose_tm(n_samples, pack):
    """Samples per grid step: big tile (amortize ~0.35us/step) but grid >= 2."""
    unit = pack * 128                      # keeps tmp = tm//pack a multiple of 128
    tm = unit * max(1, min(8192 // unit, n_samples // (2 * unit)))
    return tm


def pack_weights(weights, pack, compute_dtype=jnp.bfloat16):
    """One-time block-diagonal expansion of the per-layer weights.

    Hoisted out of the forward path (review item): builds `pack` independent
    copies of every hidden weight on the diagonal so each sample still sees its
    own un-mixed layer, and a (pack, pack*h_last) final-layer block whose row g
    carries w_out in lanes [g*h, (g+1)*h).
    """
    eye_p = jnp.eye(pack, dtype=compute_dtype)
    hidden_blocks = tuple(jnp.kron(eye_p, w.astype(compute_dtype)) for w in weights[:-1])
    w_out_block = jnp.kron(eye_p, weights[-1].T.astype(compute_dtype))
    return hidden_blocks, w_out_block


def nn_target_forward(x, weights=None, *, packed=None, pack=None, tm=None,
                      compute_dtype=jnp.bfloat16):
    """Forward pass of the bias-free ReLU MLP as one fused Pallas kernel.

    x        : (N, input_dim) array (pass bf16 x to halve HBM traffic when
               compute_dtype is bf16 -- the kernel casts only if needed).
    weights  : list of weights stored [fan_in, fan_out]; last layer fan_out == 1.
               Ignored if `packed` (from pack_weights) is given.
    packed   : optional (hidden_blocks, w_out_block) from pack_weights().
    pack     : samples packed per MXU row (default: 8 on v6e/v7x, 4 otherwise).
    tm       : samples per grid step (multiple of pack*128); default auto.
    compute_dtype: matmul operand dtype (bf16 default); accumulation is f32.
    """
    N, input_dim = x.shape
    P = pack if pack is not None else _default_pack()
    if packed is None:
        assert weights is not None
        assert weights[0].shape[0] == input_dim
        assert weights[-1].shape[1] == 1
        packed = pack_weights(weights, P, compute_dtype)
    hidden_blocks, w_out_block = packed
    compute_dtype = hidden_blocks[0].dtype if hidden_blocks else w_out_block.dtype
    assert w_out_block.shape[0] == P

    if tm is None:
        tm = _choose_tm(N, P)
    assert tm % (P * 128) == 0, "tm must be a multiple of pack*128"
    tmp = tm // P                                   # packed rows per grid step

    # Pad only to a multiple of pack (tiny; at most pack-1 rows).  No full-tile
    # padding: the ragged last grid block is handled by Pallas and the garbage
    # rows are independent samples that get sliced off below.
    n_pad = (-N) % P
    if n_pad:
        x = jnp.concatenate([x, jnp.zeros((n_pad, input_dim), x.dtype)], axis=0)
    n_rows = (N + n_pad) // P

    # Pack P consecutive samples per row: (rows*P, d) -> (rows, P*d).
    # Pure row-major bitcast (no data movement).
    x_packed = x.reshape(n_rows, P * input_dim)

    grid = (pl.cdiv(n_rows, tmp),)

    # x tile; weights use whole-array blocks with constant index_map -> resident.
    # TODO(synk): if a trace shows exposed x DMA on v7x, add
    # pipeline_mode=pl.Buffered(3) to this spec.
    in_specs = [pl.BlockSpec((tmp, P * input_dim), lambda i: (i, 0))]
    for wb in hidden_blocks:
        in_specs.append(pl.BlockSpec(wb.shape, lambda i: (0, 0)))
    in_specs.append(pl.BlockSpec(w_out_block.shape, lambda i: (0, 0)))

    out = pl.pallas_call(
        partial(_mlp_packed_kernel, compute_dtype=compute_dtype),
        out_shape=jax.ShapeDtypeStruct((grid[0], P, tmp), jnp.float32),
        grid=grid,
        in_specs=in_specs,
        out_specs=pl.BlockSpec((1, P, tmp), lambda i: (i, 0, 0)),
        compiler_params=pltpu.CompilerParams(
            dimension_semantics=("parallel",)),
    )(x_packed, *hidden_blocks, w_out_block)

    # out[i, g, r] is the output of sample (i*tmp + r)*P + g.  Un-permute the
    # (tiny) output array and restore the (N, 1) shape of the module.
    y = out.transpose(0, 2, 1).reshape(-1, 1)
    return y[:N]


def init_weights(key, layer_dims, init_variance):
    """Matches the PyTorch module: std = sqrt(2/fan_in)*sqrt(init_variance),
    normal(0, std), no bias.  Stored as [fan_in, fan_out]."""
    weights = []
    for i in range(len(layer_dims) - 1):
        key, sub = jax.random.split(key)
        fan_in, fan_out = layer_dims[i], layer_dims[i + 1]
        std = math.sqrt(2.0 / fan_in) * math.sqrt(init_variance)
        weights.append(std * jax.random.normal(sub, (fan_in, fan_out), jnp.float32))
    return weights


def reference_forward(x, weights):
    """Pure-JAX reference of the PyTorch forward()."""
    h = x
    for w in weights[:-1]:
        h = jnp.maximum(h @ w, 0.0)
    return h @ weights[-1]


if __name__ == "__main__":
    # Architecture consistent with the module: input_dim=32, hidden_layers=[32, 32]
    input_dim = 32
    hidden_layers = [32, 32]
    init_variance = 1.0
    N = 2048            # small test batch; auto-tm keeps grid >= 2

    layer_dims = [input_dim] + hidden_layers + [1]
    key = jax.random.PRNGKey(0)
    key, kx = jax.random.split(key)
    x = jax.random.normal(kx, (N, input_dim), dtype=jnp.float32)
    weights = init_weights(key, layer_dims, init_variance)

    ref = reference_forward(x, weights)
    pack = _default_pack()

    # f32 compute path (tight tolerance) -- strong correctness check.
    packed_f32 = pack_weights(weights, pack, jnp.float32)
    out_f32 = jax.block_until_ready(
        nn_target_forward(x, packed=packed_f32, pack=pack,
                          compute_dtype=jnp.float32))
    assert out_f32.shape == (N, 1)
    assert jnp.allclose(out_f32, ref, atol=1e-4, rtol=1e-4), \
        "Pallas f32 output mismatch vs reference"

    # Default bf16 path: weights packed once (hoisted), x produced in bf16 so
    # the dominant HBM stream is half-width; f32 accumulation in the kernel.
    packed_bf16 = pack_weights(weights, pack, jnp.bfloat16)
    x_bf16 = x.astype(jnp.bfloat16)   # "upstream producer" emits bf16
    out_bf16 = jax.block_until_ready(
        nn_target_forward(x_bf16, packed=packed_bf16, pack=pack))
    assert out_bf16.shape == (N, 1)
    assert jnp.allclose(out_bf16, ref, atol=1e-1, rtol=1e-1), \
        "Pallas bf16 output mismatch vs reference"

    print("KERNEL_OK")
</pallas_src>

<mosaic_0001>
module attributes {stable_mosaic.version = 11 : i64} {
  func.func @_mlp_packed_kernel(%arg0: i32, %arg1: memref<256x128xf32, #tpu.memory_space<vmem>>, %arg2: memref<128x128xf32, #tpu.memory_space<vmem>>, %arg3: memref<128x128xf32, #tpu.memory_space<vmem>>, %arg4: memref<4x128xf32, #tpu.memory_space<vmem>>, %arg5: memref<1x4x256xf32, #tpu.memory_space<vmem>>) attributes {dimension_semantics = [#tpu.dimension_semantics<parallel>], iteration_bounds = array<i64: 2>, scalar_prefetch = 0 : i64, scratch_operands = 0 : i64, tpu.core_type = #tpu.core_type<tc>, window_params = [{transform_indices = @transform_0, window_bounds = array<i64: 256, 128>}, {pipeline_mode = #tpu.pipeline_mode<synchronous>, transform_indices = @transform_1, window_bounds = array<i64: 128, 128>}, {pipeline_mode = #tpu.pipeline_mode<synchronous>, transform_indices = @transform_2, window_bounds = array<i64: 128, 128>}, {pipeline_mode = #tpu.pipeline_mode<synchronous>, transform_indices = @transform_3, window_bounds = array<i64: 4, 128>}, {transform_indices = @transform_4, window_bounds = array<i64: 1, 4, 256>}]} {
    %c0 = arith.constant 0 : index
    %c0_0 = arith.constant 0 : index
    %0 = vector.load %arg1[%c0, %c0_0] : memref<256x128xf32, #tpu.memory_space<vmem>>, vector<256x128xf32>
    %c0_1 = arith.constant 0 : index
    %c0_2 = arith.constant 0 : index
    %1 = vector.load %arg2[%c0_1, %c0_2] : memref<128x128xf32, #tpu.memory_space<vmem>>, vector<128x128xf32>
    %cst = arith.constant dense<0.000000e+00> : vector<256x128xf32>
    %2 = tpu.matmul %0, %1, %cst {dimension_numbers = #tpu.dot_dimension_numbers<[1], [0], [0], [1], [0, 0, 1, 1], [], []>} : vector<256x128xf32>, vector<128x128xf32>, vector<256x128xf32> -> vector<256x128xf32>
    %cst_3 = arith.constant 0.000000e+00 : f32
    %3 = vector.broadcast %cst_3 : f32 to vector<256x128xf32>
    %4 = arith.maximumf %2, %3 : vector<256x128xf32>
    %c0_4 = arith.constant 0 : index
    %c0_5 = arith.constant 0 : index
    %5 = vector.load %arg3[%c0_4, %c0_5] : memref<128x128xf32, #tpu.memory_space<vmem>>, vector<128x128xf32>
    %cst_6 = arith.constant dense<0.000000e+00> : vector<256x128xf32>
    %6 = tpu.matmul %4, %5, %cst_6 {dimension_numbers = #tpu.dot_dimension_numbers<[1], [0], [0], [1], [0, 0, 1, 1], [], []>} : vector<256x128xf32>, vector<128x128xf32>, vector<256x128xf32> -> vector<256x128xf32>
    %cst_7 = arith.constant 0.000000e+00 : f32
    %7 = vector.broadcast %cst_7 : f32 to vector<256x128xf32>
    %8 = arith.maximumf %6, %7 : vector<256x128xf32>
    %c0_8 = arith.constant 0 : index
    %c0_9 = arith.constant 0 : index
    %9 = vector.load %arg4[%c0_8, %c0_9] : memref<4x128xf32, #tpu.memory_space<vmem>>, vector<4x128xf32>
    %cst_10 = arith.constant dense<0.000000e+00> : vector<4x256xf32>
    %10 = tpu.matmul %9, %8, %cst_10 {dimension_numbers = #tpu.dot_dimension_numbers<[1], [1], [0], [0], [0, 0, 1, 0], [], []>} : vector<4x128xf32>, vector<256x128xf32>, vector<4x256xf32> -> vector<4x256xf32>
    %11 = vector.shape_cast %10 : vector<4x256xf32> to vector<1x4x256xf32>
    %c0_11 = arith.constant 0 : index
    %c0_12 = arith.constant 0 : index
    %c0_13 = arith.constant 0 : index
    %12 = vector.load %arg5[%c0_11, %c0_12, %c0_13] : memref<1x4x256xf32, #tpu.memory_space<vmem>>, vector<1x4x256xf32>
    tpu.vector_store %arg5[%c0_11, %c0_12, %c0_13], %11 {strides = array<i32>} : memref<1x4x256xf32, #tpu.memory_space<vmem>>, vector<1x4x256xf32>,
    return
  }
  func.func @transform_0(%arg0: i32) -> (i32, i32) {
    %c0_i32 = arith.constant 0 : i32
    %c0_i32_0 = arith.constant 0 : i32
    return %arg0, %c0_i32 : i32, i32
  }
  func.func @transform_1(%arg0: i32) -> (i32, i32) {
    %c0_i32 = arith.constant 0 : i32
    %c0_i32_0 = arith.constant 0 : i32
    %c0_i32_1 = arith.constant 0 : i32
    return %c0_i32, %c0_i32_0 : i32, i32
  }
  func.func @transform_2(%arg0: i32) -> (i32, i32) {
    %c0_i32 = arith.constant 0 : i32
    %c0_i32_0 = arith.constant 0 : i32
    %c0_i32_1 = arith.constant 0 : i32
    return %c0_i32, %c0_i32_0 : i32, i32
  }
  func.func @transform_3(%arg0: i32) -> (i32, i32) {
    %c0_i32 = arith.constant 0 : i32
    %c0_i32_0 = arith.constant 0 : i32
    %c0_i32_1 = arith.constant 0 : i32
    return %c0_i32, %c0_i32_0 : i32, i32
  }
  func.func @transform_4(%arg0: i32) -> (i32, i32, i32) {
    %c0_i32 = arith.constant 0 : i32
    %c0_i32_0 = arith.constant 0 : i32
    %c0_i32_1 = arith.constant 0 : i32
    return %arg0, %c0_i32, %c0_i32_0 : i32, i32, i32
  }
}

</mosaic_0001>

<bundles_post_ra>
// kernel: tpu_custom_call.1
= control target key start
LH: loop header
LB: loop body
LE: loop exit
PB: predicated region body
PF: predicated region fallthrough
CT: control target
= control target key end

     0   :  { %9 = vsyncpa [#allocation3], 0  ;;  %s1823_s0 = inlined_call_operand.hbm [shape: f32[512,128], index: 0, kind: input, shape index: {}]   ;;  %s1824_s1 = inlined_call_operand.hbm [shape: f32[128,128], index: 1, kind: input, shape index: {}]   ;;  %s1825_s2 = inlined_call_operand.hbm [shape: f32[128,128], index: 2, kind: input, shape index: {}]   ;;  %s1826_s3 = inlined_call_operand.vmem [shape: f32[4,128], index: 3, kind: input, shape index: {}]   ;;  %s1827_s4 = inlined_call_operand.hbm [shape: f32[2,4,256], index: 4, kind: output, shape index: {}]  }
   0x1   :  { %11 = vsyncpa [#allocation3 + $0x1], 0 }
   0x2   :  { %12 = vsyncpa [#allocation6], 0 }
   0x3   :  { %13 = vsyncpa [#allocation4], 0 }
   0x4   :  { %15 = vsyncpa [#allocation4 + $0x1], 0  ;;  %s1565_s15 = smov 0   ;;  %s1567_s16 = smov 0  }
   0x5   :  { %s1569_s17 = smov 0   ;;  %s1571_s18 = smov 0  }
   0x6 LB: > { %s1586_s19 = sadd.s32 4294967295, %s1532_s18   ;;  %s1005_s20 = sadd.s32 4294967294, %s1532_s18   ;;  %s1532_s18 = sphi %s1571_s18, %s1848_s18   ;;  %s1528_s17 = sphi %s1569_s17, %s1847_s17   ;;  %s1524_s16 = sphi %s1567_s16, %s1846_s16   ;;  %s1520_s15 = sphi %s1565_s15, %s1845_s15  }
   0x7   : > { %p41_p0 = scmp.ne.s32.totalorder %s1524_s16, %s1520_s15  ;;  %p1828_p1 = scmp.eq.s32.totalorder %s1586_s19, 0 }
   0x8   : > { %p128_p2 = scmp.eq.s32.totalorder %s1586_s19, 1  ;;  %p134_p3 = scmp.eq.s32.totalorder %s1005_s20, 1 }
   0x9   : > { %p1595_p4 = por %p1828_p1, %p41_p0  ;;  %p1006_p5 = scmp.ge.s32.totalorder %s1532_s18, 1 }
   0xa   : > { %p1600_p6 = por %p134_p3, %p41_p0  ;;  %p141_p7 = scmp.lt.s32.totalorder %s1532_s18, 3 }
   0xb   : > { %s1832_s21 = scalar_select %p1595_p4, 1, 0 }
   0xc   : > { %s1833_s22 = scalar_select %p1600_p6, 1, 0 }
   0xd   : > { %p1605_p8 = pnand %p1006_p5, %p141_p7  ;;  %s1534_s24 = smov [#allocation5]  }
   0xe   : > { %s153_s25 = sshll.u32 %s1534_s24, 4  ;;  %s1535_s27 = smov [#allocation7]   ;;  %s154_s25 = int_to_ptr.vmem [resolvable:$true] %s153_s25 }
   0xf   : > { %s1834_s23 = scalar_select %p1605_p8, 1, 0 }
  0x10   : > { %p1327_p9 = pneg %p1605_p8  ;;  %s166_s28 = sshll.u32 %s1535_s27, 4  ;;  %s167_s28 = int_to_ptr.vmem [resolvable:$true] %s166_s28 }
  0x11   : > { %s1395_s29 = scalar_lea.vmem %s154_s25, 2048  ;;  %p1403_p5 = scmp.lt.s32.totalorder %s154_s25, %s154_s25 }
  0x12   : > { %p1614_p11 = pnand %p1327_p9, %p1828_p1  ;;  %p1396_p13 = scmp.ne.s32.totalorder %s154_s25, %s1395_s29 }
  0x13   : > { %p1404_p7 = scmp.lt.s32.totalorder %s1395_s29, %s1395_s29 }
  0x14   : > { %p1386_p12 = pneg %p1614_p11 }
  0x15   : > { %p1405_p10 = por %p1404_p7, %p1403_p5 }
  0x16   : > { %p1398_p0 = pnand %p1396_p13, %p1386_p12 }
  0x18   : > { %p1399_p3 = pneg %p1398_p0 }
  0x1a   : > { %p1406_p9 = pnand %p1405_p10, %p1399_p3 }
  0x1c   : > { %1409 = shalt.err (!%p1406_p9)
}
  0x1d   : > { %s1536_s30 = smov 128   ;;  %s1537_s5 = smov 8  }
  0x1e   : > { %1330 = dma.hbm_to_vmem [thread:$0]  (!%p1614_p11), %s1824_s1, 2048, %s154_s25, [#allocation6], %s1536_s30, %s1536_s30, %s1537_s5  }
  0x1f   : > { %s1421_s8 = scalar_lea.vmem %s167_s28, 2048  ;;  %p1429_p10 = scmp.lt.s32.totalorder %s167_s28, %s167_s28 }
  0x20   : > { %p1422_p13 = scmp.ne.s32.totalorder %s167_s28, %s1421_s8  ;;  %p1430_p3 = scmp.lt.s32.totalorder %s1421_s8, %s1421_s8 }
  0x22   : > { %p1424_p0 = pnand %p1422_p13, %p1386_p12  ;;  %p1431_p7 = por %p1430_p3, %p1429_p10 }
  0x24   : > { %p1425_p5 = pneg %p1424_p0 }
  0x26   : > { %p1432_p9 = pnand %p1431_p7, %p1425_p5 }
  0x28   : > { %1435 = shalt.err (!%p1432_p9)
}
  0x29   : > { %1333 = dma.hbm_to_vmem [thread:$0]  (!%p1614_p11), %s1825_s2, 2048, %s167_s28, [#allocation6], %s1536_s30, %s1536_s30, %s1537_s5  }
  0x2a   : > { %s1643_s11 = sadd.s32 1, %s1532_s18   ;;  %s28_s12 = sadd.s32 1, %s1528_s17 }
  0x2b   : > { %s25_s13 = ssub.s32 %s1532_s18, %s1643_s11  ;;  %p35_p12 = scmp.ne.s32.totalorder %s1528_s17, %s1524_s16 }
  0x2c   : > { %p26_p13 = scmp.eq.s32.totalorder %s25_s13, 0  ;;  %p36_p0 = scmp.eq.s32.totalorder %s1532_s18, 0 }
  0x2d   : > { %p1653_p5 = por %p128_p2, %p35_p12  ;;  %p1344_p10 = scmp.lt.s32.totalorder %s1532_s18, 2 }
  0x2e   : > { %s1659_s20 = scalar_select %p26_p13, %s1528_s17, %s28_s12  }
  0x2f   : > { %s1836_s14 = scalar_select %p1653_p5, 1, 0 }
  0x30   : > { %p37_p3 = por %p36_p0, %p35_p12  ;;  %s183_s24 = sand.u32 1, %s1528_s17  }
  0x31   : > { %s1010_s25 = sshll.u32 %s183_s24, 8  ;;  %s1023_s26 = sshll.u32 %s1532_s18, 12 }
  0x32   : > { %s1666_s29 = scalar_lea.hbm %s1823_s0, %s1023_s26  ;;  %s187_s6 = scalar_lea.vmem [#allocation2], %s1010_s25 }
  0x33   : > { %s194_s7 = sshll.u32 %s187_s6, 4  ;;  %p1670_p2 = pnand %p1344_p10, %p37_p3  ;;  %s1668_s7 = int_to_ptr.vmem [resolvable:$true] %s194_s7 }
  0x34   : > { %s1674_s9 = scalar_lea.sflag [#allocation3], %s183_s24  ;;  %s1436_s10 = scalar_lea.hbm %s1666_s29, 4096 }
  0x35   : > { %p1437_p11 = scmp.ne.s32.totalorder %s1666_s29, %s1436_s10  ;;  %p1438_p7 = pneg %p1670_p2 }
  0x36   : > { %s1441_s25 = scalar_lea.hbm %s1823_s0, 8192  ;;  %p1442_p13 = scmp.lt.s32.totalorder %s1666_s29, %s1823_s0 }
  0x37   : > { %p1439_p9 = pnand %p1438_p7, %p1437_p11  ;;  %p1443_p0 = scmp.lt.s32.totalorder %s1441_s25, %s1436_s10 }
  0x39   : > { %p1440_p12 = pneg %p1439_p9  ;;  %p1444_p10 = por %p1443_p0, %p1442_p13 }
  0x3b   : > { %p1445_p3 = pnand %p1444_p10, %p1440_p12 }
  0x3d   : > { %1448 = shalt.err (!%p1445_p3)
}
  0x3e   : > { %s1449_s24 = scalar_lea.vmem %s1668_s7, 4096  ;;  %s1538_s28 = smov [#allocation2]  }
  0x3f   : > { %p1450_p1 = scmp.ne.s32.totalorder %s1668_s7, %s1449_s24  ;;  %s1454_s6 = sshll.u32 %s1538_s28, 4  ;;  %s1455_s6 = int_to_ptr.vmem [resolvable:$false] %s1454_s6 }
  0x40   : > { %s1456_s12 = scalar_lea.vmem %s1455_s6, 8192  ;;  %p1457_p9 = scmp.lt.s32.totalorder %s1668_s7, %s1455_s6 }
  0x41   : > { %p1452_p6 = pnand %p1450_p1, %p1438_p7  ;;  %p1458_p5 = scmp.lt.s32.totalorder %s1456_s12, %s1449_s24 }
  0x43   : > { %p1453_p11 = pneg %p1452_p6  ;;  %p1459_p4 = por %p1458_p5, %p1457_p9 }
  0x45   : > { %p1460_p8 = pnand %p1459_p4, %p1453_p11 }
  0x47   : > { %1463 = shalt.err (!%p1460_p8)
}
  0x48   : > { %1337 = dma.hbm_to_vmem [thread:$0]  (!%p1670_p2), %s1666_s29, 4096, %s1668_s7, %s1674_s9, %s1536_s30, %s1536_s30, %s1537_s5  }
  0x49   : > { %p1838_p1 = scmp.ne.s32.totalorder %s1834_s23, 0 }
  0x4a   : > { %s1701_s10 = sand.u32 (!%p1838_p1), 1, %s1524_s16   ;;  %p1839_p4 = scmp.ne.s32.totalorder (!%p1838_p1), %s1832_s21, 0 }
  0x4b   : > { %206 = sbr.rel (%p1838_p1) target bundleno = 844 (0x34c), region = 36  ;;  %s1014_s13 = sshll.u32 (!%p1838_p1), %s1701_s10, 8 }
  0x4c   : > { %s209_s25 = scalar_lea.sflag (!%p1838_p1), [#allocation3], %s1701_s10  ;;  %s1705_s26 = scalar_lea.vmem (!%p1838_p1), [#allocation2], %s1014_s13 }
  0x50   : > { %1507 = dma.done.wait (%p1839_p4), %s209_s25, 4096  }
  0x51   : > { %1509 = vsyncadd (%p1839_p4), %s209_s25, 4294963200  ;;  %p1840_p6 = scmp.eq.s32.totalorder %s1586_s19, 0 }
  0x53   : > { %1511 = dma.done.wait (%p1840_p6), [#allocation6], 4096   ;;  %p1841_p8 = pmov %p1840_p6 }
  0x54   : > { %v293_v0 = vld [vmem:[#allocation5 + $0x78] sm:$0xff]  ;;  %v292_v1 = vld [vmem:[#allocation5 + $0x70] sm:$0xff]  ;;  %v291_v2 = vld [vmem:[#allocation5 + $0x68] sm:$0xff]  ;;  %s1017_s30 = sshll.u32 %s1701_s10, 3  ;;  %s1024_s5 = sshll.u32 %s1586_s19, 7 }
  0x55   : > { %1513 = vsyncadd (%p1841_p8), [#allocation6], 4294963200  ;;  %1155 = vmatprep.subr.mxu0 %v293_v0  ;;  %v290_v3 = vld [vmem:[#allocation5 + $0x60] sm:$0xff]  ;;  %v289_v5 = vld [vmem:[#allocation5 + $0x58] sm:$0xff]  ;;  %s244_s29 = scalar_lea.vmem [#allocation8], %s1017_s30  ;;  %s914_s27 = scalar_lea.hbm %s1827_s4, %s1024_s5 }
  0x56   : > { %1156 = vmatpush3.msra.mxu0 %v293_v0  ;;  %v246_v4 = vld [vmem:[%s1705_s26] sm:$0xff]  ;;  %v288_v6 = vld [vmem:[#allocation5 + $0x50] sm:$0xff]  ;;  %v287_v7 = vld [vmem:[#allocation5 + $0x48] sm:$0xff]  ;;  %s916_s7 = sshll.u32 %s244_s29, 4  ;;  %s902_s24 = scalar_lea.sflag [#allocation4], %s1701_s10  ;;  %s917_s7 = int_to_ptr.vmem [resolvable:$true] %s916_s7 }
  0x57   : > { %1157 = vmatprep.subr.mxu0 %v292_v1  ;;  %1187 = vmatprep.mubr.f32.mxu0 %v246_v4  ;;  %v286_v8 = vld [vmem:[#allocation5 + $0x40] sm:$0xff]  ;;  %v285_v9 = vld [vmem:[#allocation5 + $0x38] sm:$0xff]  ;;  %v284_v10 = vld [vmem:[#allocation5 + $0x30] sm:$0xff]  ;;  %s1464_s28 = scalar_lea.vmem %s917_s7, 128  ;;  %p1842_p2 = scmp.ne.s32.totalorder %s1836_s14, 0 }
  0x58   : > { %1158 = vmatpush3.msra.mxu0 %v292_v1  ;;  %v566_v11 = vld [vmem:[#allocation7 + $0x78] sm:$0xff]  ;;  %v565_v12 = vld [vmem:[#allocation7 + $0x70] sm:$0xff]  ;;  %v283_v13 = vld [vmem:[#allocation5 + $0x28] sm:$0xff]  ;;  %p1465_p5 = scmp.ne.s32.totalorder %s917_s7, %s1464_s28  ;;  %s1539_s6 = smov [#allocation8]  }
  0x59   : > { %1159 = vmatprep.subr.mxu0 %v291_v2  ;;  %1235 = vmatprep.subr.mxu1 %v566_v11  ;;  %v564_v14 = vld [vmem:[#allocation7 + $0x68] sm:$0xff]  ;;  %v282_v15 = vld [vmem:[#allocation5 + $0x20] sm:$0xff]  ;;  %v281_v17 = vld [vmem:[#allocation5 + $0x18] sm:$0xff]  ;;  %s1468_s12 = sshll.u32 %s1539_s6, 4  ;;  %s1469_s12 = int_to_ptr.vmem [resolvable:$false] %s1468_s12 }
  0x5a   : > { %1160 = vmatpush3.msra.mxu0 %v291_v2  ;;  %1236 = vmatpush3.msra.mxu1 %v566_v11  ;;  %v563_v16 = vld [vmem:[#allocation7 + $0x60] sm:$0xff]  ;;  %v562_v18 = vld [vmem:[#allocation7 + $0x58] sm:$0xff]  ;;  %v280_v19 = vld [vmem:[#allocation5 + $0x10] sm:$0xff]  ;;  %p1466_p7 = pnand %p1465_p5, %p1842_p2  ;;  %s1470_s19 = scalar_lea.vmem %s1469_s12, 256 }
  0x5b   : > { %1161 = vmatprep.subr.mxu0 %v290_v3  ;;  %1237 = vmatprep.subr.mxu1 %v565_v12  ;;  %v561_v20 = vld [vmem:[#allocation7 + $0x50] sm:$0xff]  ;;  %v279_v21 = vld [vmem:[#allocation5 + $0x8] sm:$0xff]  ;;  %v278_v23 = vld [vmem:[#allocation5] sm:$0xff]  ;;  %p1471_p13 = scmp.lt.s32.totalorder %s917_s7, %s1469_s12  ;;  %p1472_p0 = scmp.lt.s32.totalorder %s1470_s19, %s1464_s28 }
  0x5c   : > { %1162 = vmatpush3.msra.mxu0 %v290_v3  ;;  %1238 = vmatpush3.msra.mxu1 %v565_v12  ;;  %v560_v22 = vld [vmem:[#allocation7 + $0x48] sm:$0xff]  ;;  %v559_v24 = vld [vmem:[#allocation7 + $0x40] sm:$0xff]  ;;  %v558_v26 = vld [vmem:[#allocation7 + $0x38] sm:$0xff]  ;;  %p1467_p12 = pneg %p1466_p7 }
  0x5d   : > { %1163 = vmatprep.subr.mxu0 %v289_v5  ;;  %1239 = vmatprep.subr.mxu1 %v564_v14  ;;  %v247_v25 = vld [vmem:[%s1705_s26 + $0x8] sm:$0xff]  ;;  %v248_v27 = vld [vmem:[%s1705_s26 + $0x10] sm:$0xff]  ;;  %v249_v29 = vld [vmem:[%s1705_s26 + $0x18] sm:$0xff]  ;;  %p1473_p10 = por %p1472_p0, %p1471_p13 }
  0x5e   : > { %1164 = vmatpush3.msra.mxu0 %v289_v5  ;;  %1240 = vmatpush3.msra.mxu1 %v564_v14  ;;  %v557_v28 = vld [vmem:[#allocation7 + $0x30] sm:$0xff]  ;;  %v556_v30 = vld [vmem:[#allocation7 + $0x28] sm:$0xff]  ;;  %v250_v31 = vld [vmem:[%s1705_s26 + $0x20] sm:$0xff] }
  0x5f   : > { %1165 = vmatprep.subr.mxu0 %v288_v6  ;;  %1241 = vmatprep.subr.mxu1 %v563_v16  ;;  %v555_v32 = vld [vmem:[#allocation7 + $0x20] sm:$0xff]  ;;  %v251_v33 = vld [vmem:[%s1705_s26 + $0x28] sm:$0xff]  ;;  %v554_v34 = vld [vmem:[#allocation7 + $0x18] sm:$0xff]  ;;  %p1474_p3 = pnand %p1473_p10, %p1467_p12 }
  0x60   : > { %1166 = vmatpush3.msra.mxu0 %v288_v6  ;;  %1242 = vmatpush3.msra.mxu1 %v563_v16  ;;  %v252_v35 = vld [vmem:[%s1705_s26 + $0x30] sm:$0xff]  ;;  %v253_v36 = vld [vmem:[%s1705_s26 + $0x38] sm:$0xff]  ;;  %v254_v37 = vld [vmem:[%s1705_s26 + $0x40] sm:$0xff] }
  0x61   : > { %1167 = vmatprep.subr.mxu0 %v287_v7  ;;  %1243 = vmatprep.subr.mxu1 %v562_v18  ;;  %v255_v38 = vld [vmem:[%s1705_s26 + $0x48] sm:$0xff]  ;;  %v256_v39 = vld [vmem:[%s1705_s26 + $0x50] sm:$0xff]  ;;  %v257_v40 = vld [vmem:[%s1705_s26 + $0x58] sm:$0xff] }
  0x62   : > { %1168 = vmatpush3.msra.mxu0 %v287_v7  ;;  %1244 = vmatpush3.msra.mxu1 %v562_v18  ;;  %v258_v41 = vld [vmem:[%s1705_s26 + $0x60] sm:$0xff]  ;;  %v259_v42 = vld [vmem:[%s1705_s26 + $0x68] sm:$0xff]  ;;  %v260_v43 = vld [vmem:[%s1705_s26 + $0x70] sm:$0xff] }
  0x63   : > { %1169 = vmatprep.subr.mxu0 %v286_v8  ;;  %1245 = vmatprep.subr.mxu1 %v561_v20  ;;  %v261_v44 = vld [vmem:[%s1705_s26 + $0x78] sm:$0xff]  ;;  %v262_v45 = vld [vmem:[%s1705_s26 + $0x80] sm:$0xff]  ;;  %v263_v46 = vld [vmem:[%s1705_s26 + $0x88] sm:$0xff] }
  0x64   : > { %1170 = vmatpush3.msra.mxu0 %v286_v8  ;;  %1246 = vmatpush3.msra.mxu1 %v561_v20  ;;  %v264_v47 = vld [vmem:[%s1705_s26 + $0x90] sm:$0xff]  ;;  %v265_v48 = vld [vmem:[%s1705_s26 + $0x98] sm:$0xff]  ;;  %v266_v49 = vld [vmem:[%s1705_s26 + $0xa0] sm:$0xff] }
  0x65   : > { %1171 = vmatprep.subr.mxu0 %v285_v9  ;;  %1247 = vmatprep.subr.mxu1 %v560_v22  ;;  %v267_v50 = vld [vmem:[%s1705_s26 + $0xa8] sm:$0xff]  ;;  %v268_v51 = vld [vmem:[%s1705_s26 + $0xb0] sm:$0xff]  ;;  %v269_v52 = vld [vmem:[%s1705_s26 + $0xb8] sm:$0xff] }
  0x66   : > { %1172 = vmatpush3.msra.mxu0 %v285_v9  ;;  %1248 = vmatpush3.msra.mxu1 %v560_v22  ;;  %v270_v53 = vld [vmem:[%s1705_s26 + $0xc0] sm:$0xff]  ;;  %v271_v54 = vld [vmem:[%s1705_s26 + $0xc8] sm:$0xff]  ;;  %v272_v55 = vld [vmem:[%s1705_s26 + $0xd0] sm:$0xff] }
  0x67   : > { %1173 = vmatprep.subr.mxu0 %v284_v10  ;;  %1249 = vmatprep.subr.mxu1 %v559_v24  ;;  %v273_v56 = vld [vmem:[%s1705_s26 + $0xd8] sm:$0xff]  ;;  %v274_v57 = vld [vmem:[%s1705_s26 + $0xe0] sm:$0xff]  ;;  %v275_v58 = vld [vmem:[%s1705_s26 + $0xe8] sm:$0xff] }
  0x68   : > { %1174 = vmatpush3.msra.mxu0 %v284_v10  ;;  %1250 = vmatpush3.msra.mxu1 %v559_v24  ;;  %v276_v59 = vld [vmem:[%s1705_s26 + $0xf0] sm:$0xff]  ;;  %v277_v60 = vld [vmem:[%s1705_s26 + $0xf8] sm:$0xff]  ;;  %v552_v62 = vld [vmem:[#allocation7 + $0x8] sm:$0xff] }
  0x69   : > { %1175 = vmatprep.subr.mxu0 %v283_v13  ;;  %1251 = vmatprep.subr.mxu1 %v558_v26  ;;  %v553_v61 = vld [vmem:[#allocation7 + $0x10] sm:$0xff]  ;;  %v551_v63 = vld [vmem:[#allocation7] sm:$0xff] }
  0x6a   : > { %1176 = vmatpush3.msra.mxu0 %v283_v13  ;;  %1252 = vmatpush3.msra.mxu1 %v558_v26 }
  0x6b   : > { %1177 = vmatprep.subr.mxu0 %v282_v15  ;;  %1253 = vmatprep.subr.mxu1 %v557_v28 }
  0x6c   : > { %1178 = vmatpush3.msra.mxu0 %v282_v15  ;;  %1254 = vmatpush3.msra.mxu1 %v557_v28 }
  0x6d   : > { %1179 = vmatprep.subr.mxu0 %v281_v17  ;;  %1255 = vmatprep.subr.mxu1 %v556_v30 }
  0x6e   : > { %1180 = vmatpush3.msra.mxu0 %v281_v17  ;;  %1256 = vmatpush3.msra.mxu1 %v556_v30 }
  0x6f   : > { %1181 = vmatprep.subr.mxu0 %v280_v19  ;;  %1257 = vmatprep.subr.mxu1 %v555_v32 }
  0x70   : > { %1182 = vmatpush3.msra.mxu0 %v280_v19  ;;  %1258 = vmatpush3.msra.mxu1 %v555_v32 }
  0x71   : > { %1183 = vmatprep.subr.mxu0 %v279_v21  ;;  %1259 = vmatprep.subr.mxu1 %v554_v34 }
  0x72   : > { %1184 = vmatpush3.msra.mxu0 %v279_v21  ;;  %1260 = vmatpush3.msra.mxu1 %v554_v34 }
  0x73   : > { %1185 = vmatprep.subr.mxu0 %v278_v23  ;;  %1261 = vmatprep.subr.mxu1 %v553_v61 }
  0x74   : > { %1186 = vmatpush3.msra.mxu0 %v278_v23  ;;  %1262 = vmatpush3.msra.mxu1 %v553_v61 }
  0x75   : > { %1188 = vmatmul.mubr.f32.vlgmr.msra.gmra.mxu0 %v247_v25  ;;  %1263 = vmatprep.subr.mxu1 %v552_v62 }
  0x76   : > { %1190 = vmatprep.mubr.f32.mxu0 %v248_v27  ;;  %1264 = vmatpush3.msra.mxu1 %v552_v62 }
  0x77   : > { %1265 = vmatprep.subr.mxu1 %v551_v63 }
  0x78   : > { %1266 = vmatpush3.msra.mxu1 %v551_v63 }
  0x79   : > { %1191 = vmatmul.mubr.f32.gmra.mxu0 %v249_v29 }
  0x7a   : > { %1193 = vmatprep.mubr.f32.mxu0 %v250_v31 }
  0x7d   : > { %1194 = vmatmul.mubr.f32.gmra.mxu0 %v251_v33 }
  0x7e   : > { %1196 = vmatprep.mubr.f32.mxu0 %v252_v35 }
  0x81   : > { %1197 = vmatmul.mubr.f32.gmra.mxu0 %v253_v36 }
  0x82   : > { %1199 = vmatprep.mubr.f32.mxu0 %v254_v37 }
  0x85   : > { %1200 = vmatmul.mubr.f32.gmra.mxu0 %v255_v38 }
  0x86   : > { %1202 = vmatprep.mubr.f32.mxu0 %v256_v39 }
  0x89   : > { %1203 = vmatmul.mubr.f32.gmra.mxu0 %v257_v40 }
  0x8a   : > { %1205 = vmatprep.mubr.f32.mxu0 %v258_v41 }
  0x8d   : > { %1206 = vmatmul.mubr.f32.gmra.mxu0 %v259_v42 }
  0x8e   : > { %1208 = vmatprep.mubr.f32.mxu0 %v260_v43 }
  0x91   : > { %1209 = vmatmul.mubr.f32.gmra.mxu0 %v261_v44 }
  0x92   : > { %1211 = vmatprep.mubr.f32.mxu0 %v262_v45 }
  0x95   : > { %1212 = vmatmul.mubr.f32.gmra.mxu0 %v263_v46 }
  0x96   : > { %1214 = vmatprep.mubr.f32.mxu0 %v264_v47 }
  0x99   : > { %1215 = vmatmul.mubr.f32.gmra.mxu0 %v265_v48 }
  0x9a   : > { %1217 = vmatprep.mubr.f32.mxu0 %v266_v49 }
  0x9d   : > { %1218 = vmatmul.mubr.f32.gmra.mxu0 %v267_v50 }
  0x9e   : > { %1220 = vmatprep.mubr.f32.mxu0 %v268_v51 }
  0xa1   : > { %1221 = vmatmul.mubr.f32.gmra.mxu0 %v269_v52 }
  0xa2   : > { %1223 = vmatprep.mubr.f32.mxu0 %v270_v53 }
  0xa5   : > { %1224 = vmatmul.mubr.f32.gmra.mxu0 %v271_v54 }
  0xa6   : > { %1226 = vmatprep.mubr.f32.mxu0 %v272_v55 }
  0xa9   : > { %1227 = vmatmul.mubr.f32.gmra.mxu0 %v273_v56 }
  0xaa   : > { %1229 = vmatprep.mubr.f32.mxu0 %v274_v57 }
  0xad   : > { %1230 = vmatmul.mubr.f32.gmra.mxu0 %v275_v58 }
  0xae   : > { %1232 = vmatprep.mubr.f32.mxu0 %v276_v59 }
  0xb1   : > { %1233 = vmatmul.mubr.f32.gmra.mxu0 %v277_v60 }
 0x135   : > { %v1189_v0 = vpop.f32.mrf.mxu0 }
 0x136   : > { %v520_v3 = vmax.f32 %v1189_v0, 0.0  ;;  %v1750_v0 = vld [vmem:[%s1826_s3] sm:$0xf] }
 0x137   : > { %v360_v1 = vpop.f32.mrf.mxu0  ;;  %1153 = vmatprep.mubr.f32.mxu0 %v1750_v0 }
 0x138   : > { %v519_v2 = vmax.f32 %v360_v1, 0.0 }
 0x139   : > { %v1192_v4 = vpop.f32.mrf.mxu0 }
 0x13a   : > { %1267 = vmatprep.mubr.f32.mxu1 %v519_v2  ;;  %v522_v7 = vmax.f32 %v1192_v4, 0.0 }
 0x13b   : > { %v370_v5 = vpop.f32.mrf.mxu0  ;;  %1268 = vmatmul.mubr.f32.vlgmr.msra.gmra.mxu1 %v520_v3 }
 0x13c   : > { %v521_v6 = vmax.f32 %v370_v5, 0.0 }
 0x13d   : > { %v1195_v8 = vpop.f32.mrf.mxu0 }
 0x13e   : > { %1270 = vmatprep.mubr.f32.mxu1 %v521_v6  ;;  %v524_v11 = vmax.f32 %v1195_v8, 0.0 }
 0x13f   : > { %v380_v9 = vpop.f32.mrf.mxu0  ;;  %1271 = vmatmul.mubr.f32.gmra.mxu1 %v522_v7 }
 0x140   : > { %v523_v10 = vmax.f32 %v380_v9, 0.0 }
 0x141   : > { %v1198_v12 = vpop.f32.mrf.mxu0 }
 0x142   : > { %1273 = vmatprep.mubr.f32.mxu1 %v523_v10  ;;  %v526_v15 = vmax.f32 %v1198_v12, 0.0 }
 0x143   : > { %v390_v13 = vpop.f32.mrf.mxu0  ;;  %1274 = vmatmul.mubr.f32.gmra.mxu1 %v524_v11 }
 0x144   : > { %v525_v14 = vmax.f32 %v390_v13, 0.0 }
 0x145   : > { %v1201_v16 = vpop.f32.mrf.mxu0 }
 0x146   : > { %1276 = vmatprep.mubr.f32.mxu1 %v525_v14  ;;  %v528_v19 = vmax.f32 %v1201_v16, 0.0 }
 0x147   : > { %v400_v17 = vpop.f32.mrf.mxu0  ;;  %1277 = vmatmul.mubr.f32.gmra.mxu1 %v526_v15 }
 0x148   : > { %v527_v18 = vmax.f32 %v400_v17, 0.0 }
 0x149   : > { %v1204_v20 = vpop.f32.mrf.mxu0 }
 0x14a   : > { %1279 = vmatprep.mubr.f32.mxu1 %v527_v18  ;;  %v530_v23 = vmax.f32 %v1204_v20, 0.0 }
 0x14b   : > { %v410_v21 = vpop.f32.mrf.mxu0  ;;  %1280 = vmatmul.mubr.f32.gmra.mxu1 %v528_v19 }
 0x14c   : > { %v529_v22 = vmax.f32 %v410_v21, 0.0 }
 0x14d   : > { %v1207_v24 = vpop.f32.mrf.mxu0 }
 0x14e   : > { %1282 = vmatprep.mubr.f32.mxu1 %v529_v22  ;;  %v532_v27 = vmax.f32 %v1207_v24, 0.0 }
 0x14f   : > { %v420_v25 = vpop.f32.mrf.mxu0  ;;  %1283 = vmatmul.mubr.f32.gmra.mxu1 %v530_v23 }
 0x150   : > { %v531_v26 = vmax.f32 %v420_v25, 0.0 }
 0x151   : > { %v1210_v28 = vpop.f32.mrf.mxu0 }
 0x152   : > { %1285 = vmatprep.mubr.f32.mxu1 %v531_v26  ;;  %v534_v31 = vmax.f32 %v1210_v28, 0.0 }
 0x153   : > { %v430_v29 = vpop.f32.mrf.mxu0  ;;  %1286 = vmatmul.mubr.f32.gmra.mxu1 %v532_v27 }
 0x154   : > { %v533_v30 = vmax.f32 %v430_v29, 0.0 }
 0x155   : > { %v1213_v32 = vpop.f32.mrf.mxu0 }
 0x156   : > { %1288 = vmatprep.mubr.f32.mxu1 %v533_v30  ;;  %v536_v35 = vmax.f32 %v1213_v32, 0.0 }
 0x157   : > { %v440_v33 = vpop.f32.mrf.mxu0  ;;  %1289 = vmatmul.mubr.f32.gmra.mxu1 %v534_v31 }
 0x158   : > { %v535_v34 = vmax.f32 %v440_v33, 0.0 }
 0x159   : > { %v1216_v36 = vpop.f32.mrf.mxu0 }
 0x15a   : > { %1291 = vmatprep.mubr.f32.mxu1 %v535_v34  ;;  %v538_v39 = vmax.f32 %v1216_v36, 0.0 }
 0x15b   : > { %v450_v37 = vpop.f32.mrf.mxu0  ;;  %1292 = vmatmul.mubr.f32.gmra.mxu1 %v536_v35 }
 0x15c   : > { %v537_v38 = vmax.f32 %v450_v37, 0.0 }
 0x15d   : > { %v1219_v40 = vpop.f32.mrf.mxu0 }
 0x15e   : > { %1294 = vmatprep.mubr.f32.mxu1 %v537_v38  ;;  %v540_v43 = vmax.f32 %v1219_v40, 0.0 }
 0x15f   : > { %v460_v41 = vpop.f32.mrf.mxu0  ;;  %1295 = vmatmul.mubr.f32.gmra.mxu1 %v538_v39 }
 0x160   : > { %v539_v42 = vmax.f32 %v460_v41, 0.0 }
 0x161   : > { %v1222_v44 = vpop.f32.mrf.mxu0 }
 0x162   : > { %1297 = vmatprep.mubr.f32.mxu1 %v539_v42  ;;  %v542_v47 = vmax.f32 %v1222_v44, 0.0 }
 0x163   : > { %v470_v45 = vpop.f32.mrf.mxu0  ;;  %1298 = vmatmul.mubr.f32.gmra.mxu1 %v540_v43 }
 0x164   : > { %v541_v46 = vmax.f32 %v470_v45, 0.0 }
 0x165   : > { %v1225_v48 = vpop.f32.mrf.mxu0 }
 0x166   : > { %1300 = vmatprep.mubr.f32.mxu1 %v541_v46  ;;  %v544_v51 = vmax.f32 %v1225_v48, 0.0 }
 0x167   : > { %v480_v49 = vpop.f32.mrf.mxu0  ;;  %1301 = vmatmul.mubr.f32.gmra.mxu1 %v542_v47 }
 0x168   : > { %v543_v50 = vmax.f32 %v480_v49, 0.0 }
 0x169   : > { %v1228_v52 = vpop.f32.mrf.mxu0 }
 0x16a   : > { %1303 = vmatprep.mubr.f32.mxu1 %v543_v50  ;;  %v546_v55 = vmax.f32 %v1228_v52, 0.0 }
 0x16b   : > { %v490_v53 = vpop.f32.mrf.mxu0  ;;  %1304 = vmatmul.mubr.f32.gmra.mxu1 %v544_v51 }
 0x16c   : > { %v545_v54 = vmax.f32 %v490_v53, 0.0 }
 0x16d   : > { %v1231_v56 = vpop.f32.mrf.mxu0 }
 0x16e   : > { %1306 = vmatprep.mubr.f32.mxu1 %v545_v54  ;;  %v548_v59 = vmax.f32 %v1231_v56, 0.0 }
 0x16f   : > { %v500_v57 = vpop.f32.mrf.mxu0  ;;  %1307 = vmatmul.mubr.f32.gmra.mxu1 %v546_v55 }
 0x170   : > { %v547_v58 = vmax.f32 %v500_v57, 0.0 }
 0x171   : > { %v1234_v60 = vpop.f32.mrf.mxu0 }
 0x172   : > { %1309 = vmatprep.mubr.f32.mxu1 %v547_v58  ;;  %v550_v63 = vmax.f32 %v1234_v60, 0.0 }
 0x173   : > { %v510_v61 = vpop.f32.mrf.mxu0  ;;  %1310 = vmatmul.mubr.f32.gmra.mxu1 %v548_v59 }
 0x174   : > { %v549_v62 = vmax.f32 %v510_v61, 0.0 }
 0x176   : > { %1312 = vmatprep.mubr.f32.mxu1 %v549_v62 }
 0x177   : > { %1313 = vmatmul.mubr.f32.gmra.mxu1 %v550_v63 }
 0x1fb   : > { %v1753_v1 = vpop.f32.mrf.mxu1 }
 0x1fc   : > { %v793_v62 = vmax.f32 %v1753_v1, 0.0 }
 0x1fd   : > { %v1755_v2 = vpop.f32.mrf.mxu1 }
 0x1ff   : > { %v1757_v3 = vpop.f32.mrf.mxu1 }
 0x200   : > { %v795_v58 = vmax.f32 %v1757_v3, 0.0  ;;  %v792_v3 = vmax.f32 %v1755_v2, 0.0 }
 0x201   : > { %v1759_v4 = vpop.f32.mrf.mxu1 }
 0x202   : > { %v794_v60 = vmax.f32 %v1759_v4, 0.0 }
 0x203   : > { %v1761_v5 = vpop.f32.mrf.mxu1 }
 0x204   : > { %v797_v54 = vmax.f32 %v1761_v5, 0.0 }
 0x205   : > { %v1763_v6 = vpop.f32.mrf.mxu1 }
 0x206   : > { %v796_v56 = vmax.f32 %v1763_v6, 0.0 }
 0x207   : > { %v1278_v7 = vpop.f32.mrf.mxu1 }
 0x208   : > { %v799_v50 = vmax.f32 %v1278_v7, 0.0 }
 0x209   : > { %v1765_v8 = vpop.f32.mrf.mxu1 }
 0x20a   : > { %v798_v52 = vmax.f32 %v1765_v8, 0.0 }
 0x20b   : > { %v1281_v9 = vpop.f32.mrf.mxu1 }
 0x20c   : > { %v801_v46 = vmax.f32 %v1281_v9, 0.0 }
 0x20d   : > { %v673_v10 = vpop.f32.mrf.mxu1 }
 0x20e   : > { %v800_v48 = vmax.f32 %v673_v10, 0.0 }
 0x20f   : > { %v1284_v11 = vpop.f32.mrf.mxu1 }
 0x210   : > { %v803_v42 = vmax.f32 %v1284_v11, 0.0 }
 0x211   : > { %v683_v12 = vpop.f32.mrf.mxu1 }
 0x212   : > { %v802_v44 = vmax.f32 %v683_v12, 0.0 }
 0x213   : > { %v1287_v13 = vpop.f32.mrf.mxu1 }
 0x214   : > { %v805_v38 = vmax.f32 %v1287_v13, 0.0 }
 0x215   : > { %v693_v14 = vpop.f32.mrf.mxu1 }
 0x216   : > { %v804_v40 = vmax.f32 %v693_v14, 0.0 }
 0x217   : > { %v1290_v15 = vpop.f32.mrf.mxu1 }
 0x218   : > { %v807_v33 = vmax.f32 %v1290_v15, 0.0 }
 0x219   : > { %v703_v16 = vpop.f32.mrf.mxu1 }
 0x21a   : > { %v806_v36 = vmax.f32 %v703_v16, 0.0 }
 0x21b   : > { %v1767_v17 = vpop.f32.mrf.mxu1 }
 0x21c   : > { %v809_v61 = vmax.f32 %v1767_v17, 0.0 }
 0x21d   : > { %v1769_v18 = vpop.f32.mrf.mxu1 }
 0x21e   : > { %v808_v63 = vmax.f32 %v1769_v18, 0.0 }
 0x21f   : > { %v1771_v19 = vpop.f32.mrf.mxu1 }
 0x220   : > { %v811_v57 = vmax.f32 %v1771_v19, 0.0 }
 0x221   : > { %v1773_v20 = vpop.f32.mrf.mxu1 }
 0x222   : > { %v810_v59 = vmax.f32 %v1773_v20, 0.0 }
 0x223   : > { %v1299_v21 = vpop.f32.mrf.mxu1 }
 0x224   : > { %v813_v53 = vmax.f32 %v1299_v21, 0.0 }
 0x225   : > { %v733_v22 = vpop.f32.mrf.mxu1 }
 0x226   : > { %v812_v55 = vmax.f32 %v733_v22, 0.0 }
 0x227   : > { %v1302_v23 = vpop.f32.mrf.mxu1 }
 0x228   : > { %v815_v49 = vmax.f32 %v1302_v23, 0.0 }
 0x229   : > { %v743_v24 = vpop.f32.mrf.mxu1 }
 0x22a   : > { %v814_v51 = vmax.f32 %v743_v24, 0.0 }
 0x22b   : > { %v1305_v25 = vpop.f32.mrf.mxu1 }
 0x22c   : > { %v817_v45 = vmax.f32 %v1305_v25, 0.0 }
 0x22d   : > { %v753_v26 = vpop.f32.mrf.mxu1 }
 0x22e   : > { %v816_v47 = vmax.f32 %v753_v26, 0.0 }
 0x22f   : > { %v1308_v27 = vpop.f32.mrf.mxu1 }
 0x230   : > { %v819_v41 = vmax.f32 %v1308_v27, 0.0 }
 0x231   : > { %v763_v28 = vpop.f32.mrf.mxu1 }
 0x232   : > { %v818_v43 = vmax.f32 %v763_v28, 0.0 }
 0x233   : > { %v1311_v29 = vpop.f32.mrf.mxu1 }
 0x234   : > { %v821_v37 = vmax.f32 %v1311_v29, 0.0 }
 0x235   : > { %v773_v30 = vpop.f32.mrf.mxu1 }
 0x236   : > { %v820_v39 = vmax.f32 %v773_v30, 0.0 }
 0x237   : > { %v1314_v31 = vpop.f32.mrf.mxu1 }
 0x238   : > { %v823_v32 = vmax.f32 %v1314_v31, 0.0 }
 0x239   : > { %v783_v34 = vpop.f32.mrf.mxu1 }
 0x23a   : > { %v822_v35 = vmax.f32 %v783_v34, 0.0  ;;  %1121 = vmatprep.subr.mxu0 %v823_v32 }
 0x23b   : > { %1122 = vmatpush3.xpose.msra.mxu0 %v807_v33 }
 0x23c   : > { %1123 = vmatprep.subr.mxu0 %v822_v35 }
 0x23f   : > { %1124 = vmatpush3.xpose.msra.mxu0 %v806_v36 }
 0x240   : > { %1125 = vmatprep.subr.mxu0 %v821_v37 }
 0x243   : > { %1126 = vmatpush3.xpose.msra.mxu0 %v805_v38 }
 0x244   : > { %1127 = vmatprep.subr.mxu0 %v820_v39 }
 0x247   : > { %1128 = vmatpush3.xpose.msra.mxu0 %v804_v40 }
 0x248   : > { %1129 = vmatprep.subr.mxu0 %v819_v41 }
 0x24b   : > { %1130 = vmatpush3.xpose.msra.mxu0 %v803_v42 }
 0x24c   : > { %1131 = vmatprep.subr.mxu0 %v818_v43 }
 0x24f   : > { %1132 = vmatpush3.xpose.msra.mxu0 %v802_v44 }
 0x250   : > { %1133 = vmatprep.subr.mxu0 %v817_v45 }
 0x253   : > { %1134 = vmatpush3.xpose.msra.mxu0 %v801_v46 }
 0x254   : > { %1135 = vmatprep.subr.mxu0 %v816_v47 }
 0x257   : > { %1136 = vmatpush3.xpose.msra.mxu0 %v800_v48 }
 0x258   : > { %1137 = vmatprep.subr.mxu0 %v815_v49 }
 0x25b   : > { %1138 = vmatpush3.xpose.msra.mxu0 %v799_v50 }
 0x25c   : > { %1139 = vmatprep.subr.mxu0 %v814_v51 }
 0x25f   : > { %1140 = vmatpush3.xpose.msra.mxu0 %v798_v52 }
 0x260   : > { %1141 = vmatprep.subr.mxu0 %v813_v53 }
 0x263   : > { %1142 = vmatpush3.xpose.msra.mxu0 %v797_v54 }
 0x264   : > { %1143 = vmatprep.subr.mxu0 %v812_v55 }
 0x267   : > { %1144 = vmatpush3.xpose.msra.mxu0 %v796_v56 }
 0x268   : > { %1145 = vmatprep.subr.mxu0 %v811_v57 }
 0x26b   : > { %1146 = vmatpush3.xpose.msra.mxu0 %v795_v58 }
 0x26c   : > { %1147 = vmatprep.subr.mxu0 %v810_v59 }
 0x26f   : > { %1148 = vmatpush3.xpose.msra.mxu0 %v794_v60 }
 0x270   : > { %1149 = vmatprep.subr.mxu0 %v809_v61 }
 0x273   : > { %1150 = vmatpush3.xpose.msra.mxu0 %v793_v62 }
 0x274   : > { %1151 = vmatprep.subr.mxu0 %v808_v63 }
 0x277   : > { %1152 = vmatpush3.xpose.msra.mxu0 %v792_v3 }
 0x27a   : > { %1154 = vmatmul.mubr.f32.vlgmr.msra.gmra.mxu0 %v1750_v0 }
 0x33a   : > { %v891_v5 = vpop.f32.mrf.mxu0 }
 0x33c   : > { %v893_v4 = vpop.f32.mrf.mxu0 }
 0x33d   : > { %v898_v6 = vcombine.low %v891_v5, %v893_v4 }
 0x33f   : > { %900 = vst [vmem:[%s244_s29] sm:$0xff] %v898_v6 }
 0x340   : > { %1477 = shalt.err (!%p1474_p3)
}
 0x341   : > { %s1478_s13 = scalar_lea.hbm %s914_s27, 128  ;;  %s1482_s26 = scalar_lea.hbm %s1827_s4, 256 }
 0x342   : > { %p1479_p11 = scmp.ne.s32.totalorder %s914_s27, %s1478_s13  ;;  %p1483_p4 = scmp.lt.s32.totalorder %s914_s27, %s1827_s4 }
 0x343   : > { %p1484_p6 = scmp.lt.s32.totalorder %s1482_s26, %s1478_s13 }
 0x344   : > { %p1480_p9 = pnand %p1479_p11, %p1842_p2 }
 0x345   : > { %p1485_p8 = por %p1484_p6, %p1483_p4 }
 0x346   : > { %p1481_p1 = pneg %p1480_p9 }
 0x348   : > { %p1486_p5 = pnand %p1485_p8, %p1481_p1 }
 0x34a   : > { %1489 = shalt.err (!%p1486_p5)
}
 0x34b   : > { %1325 = dma.vmem_to_hbm [thread:$0]  (%p1842_p2), %s917_s7, 128, %s914_s27, %s902_s24  }
 0x34c PF: > { %s928_s30 = sand.u32 1, %s1520_s15   ;;  %p1843_p7 = scmp.ne.s32.totalorder %s1833_s22, 0 }
 0x34d   : > { %p1844_p12 = scmp.ge.s32.totalorder %s1532_s18, 2  ;;  %s929_s5 = scalar_lea.sflag [#allocation4], %s928_s30 }
 0x34f   : > { %p1339_p13 = pnand %p1844_p12, %p1843_p7 }
 0x351   : > { %p1340_p0 = pneg %p1339_p13 }
 0x353   : > { %1515 = dma.done.wait (%p1340_p0), %s929_s5, 128  }
 0x354   : > { %1517 = vsyncadd (%p1340_p0), %s929_s5, 4294967168  ;;  %p18_p10 = scmp.ge.s32.totalorder %s1643_s11, 4   ;;  %s1845_s15 = smov %s1524_s16 }
 0x355   : > { %s1846_s16 = smov %s1528_s17  ;;  %s1847_s17 = smov %s1659_s20 }
 0x356   : > { %s1848_s18 = smov %s1643_s11  ;;  %20 = sbr.rel (!%p18_p10) target bundleno = 6 (0x6), region = 89 }
 0x35b   :  { %934 = vsyncpa [#allocation3], 1 }
 0x35c   :  { %936 = vsyncpa [#allocation3 + $0x1], 1 }
 0x35d   :  { %937 = vsyncpa [#allocation6], 1 }
 0x35e   :  { %938 = vsyncpa [#allocation4], 1 }
 0x35f   :  { %940 = vsyncpa [#allocation4 + $0x1], 1 }

</bundles_post_ra>
